<compile_context>
chip_gen: v5e
topology: v5e:2x2
jax: 0.10.0
libtpu: 0.0.40
codegen_flags: <defaults>
</compile_context>

<pallas_src>
import functools

import jax
import jax.numpy as jnp
from jax.experimental import pallas as pl
from jax.experimental.pallas import tpu as pltpu


def _round_up(x, m):
    return (x + m - 1) // m * m


def _embed_kernel(patches_ref, w_ref, add_ref, out_ref):
    # patches_ref: (1, TM, Kp) bf16   w_ref: (Kp, Dp) bf16
    # add_ref:     (TM, Dp)   f32     out_ref: (1, TM, Dp) f32
    emb = jnp.dot(patches_ref[0], w_ref[...],
                  preferred_element_type=jnp.float32)        # MXU, f32 accumulate
    out_ref[0] = emb + add_ref[...]                          # single fused epilogue add


@functools.partial(jax.jit, static_argnames=("patch_size",))
def embedding_layer_forward(x, conv_w, conv_b, cls_token, pos_embed, patch_size):
    """x: (B, C, H, W) float32 (NCHW, same as PyTorch).

    conv_w: (D, C, ps, ps), conv_b: (D,), cls_token: (1, 1, D),
    pos_embed: (1, N+1, D).  Returns (B, N+1, D) float32.
    """
    B, C, H, W = x.shape
    D = conv_w.shape[0]
    ps = patch_size
    Hp, Wp = H // ps, W // ps
    N = Hp * Wp
    K = C * ps * ps

    # MXU / lane friendly padded sizes.
    Kp = _round_up(K, 128)
    Dp = _round_up(D, 128)
    TM = min(_round_up(N, 8), 256)          # token-tile rows (multiple of 8)
    Np = _round_up(_round_up(N, 8), TM)     # padded token count, multiple of TM

    # --- patchify (== Conv2d with kernel=stride=ps), cast to bf16, pad ---
    patches = x.reshape(B, C, Hp, ps, Wp, ps).transpose(0, 2, 4, 1, 3, 5)
    patches = patches.reshape(B, N, K).astype(jnp.bfloat16)
    patches = jnp.pad(patches, ((0, 0), (0, Np - N), (0, Kp - K)))

    # conv weight (D, C, ps, ps) -> matmul weight (K, D) -> padded (Kp, Dp) bf16
    w_mat = conv_w.reshape(D, K).T.astype(jnp.bfloat16)
    w_mat = jnp.pad(w_mat, ((0, Kp - K), (0, Dp - D)))

    # Fused epilogue addend for the patch tokens: bias + pos[1:]  (f32)
    add_patch = (pos_embed[0, 1:, :] + conv_b[None, :]).astype(jnp.float32)
    add_patch = jnp.pad(add_patch, ((0, Np - N), (0, Dp - D)))

    grid = (B, Np // TM)
    out = pl.pallas_call(
        _embed_kernel,
        out_shape=jax.ShapeDtypeStruct((B, Np, Dp), jnp.float32),
        grid_spec=pltpu.PrefetchScalarGridSpec(
            num_scalar_prefetch=0,
            grid=grid,
            in_specs=[
                pl.BlockSpec((1, TM, Kp), lambda b, m: (b, m, 0)),  # patches
                pl.BlockSpec((Kp, Dp), lambda b, m: (0, 0)),        # weight (resident)
                pl.BlockSpec((TM, Dp), lambda b, m: (m, 0)),        # bias+pos addend
            ],
            out_specs=pl.BlockSpec((1, TM, Dp), lambda b, m: (b, m, 0)),
        ),
        compiler_params=pltpu.CompilerParams(
            dimension_semantics=("parallel", "parallel")),
    )(patches, w_mat, add_patch)

    tokens = out[:, :N, :D]  # drop padding (fused into this jit)

    # cls token row is batch independent: cls + pos[0], broadcast over batch.
    cls_row = (cls_token.reshape(1, 1, D) + pos_embed[:, 0:1, :]).astype(jnp.float32)
    cls_row = jnp.broadcast_to(cls_row, (B, 1, D))
    return jnp.concatenate([cls_row, tokens], axis=1)


def _reference(x, conv_w, conv_b, cls_token, pos_embed, patch_size):
    B, C, H, W = x.shape
    D = conv_w.shape[0]
    ps = patch_size
    Hp, Wp = H // ps, W // ps
    N = Hp * Wp
    K = C * ps * ps
    patches = x.reshape(B, C, Hp, ps, Wp, ps).transpose(0, 2, 4, 1, 3, 5).reshape(B, N, K)
    w_mat = conv_w.reshape(D, K).T
    emb = patches @ w_mat + conv_b[None, None, :]
    cls = jnp.broadcast_to(cls_token, (B, 1, D))
    z = jnp.concatenate([cls, emb], axis=1)
    return z + pos_embed


if __name__ == "__main__":
    # small shapes consistent with the module
    B, C, H, W = 2, 4, 16, 16
    patch_size = 4
    embed_dim = 32
    num_tokens = (H // patch_size) ** 2 + 1  # +1 for cls

    key = jax.random.PRNGKey(0)
    kx, kw, kb, kc, kp = jax.random.split(key, 5)

    x = jax.random.normal(kx, (B, C, H, W), dtype=jnp.float32)

    fan_in = C * patch_size * patch_size
    conv_w = jax.random.uniform(kw, (embed_dim, C, patch_size, patch_size),
                                dtype=jnp.float32,
                                minval=-1.0 / jnp.sqrt(fan_in),
                                maxval=1.0 / jnp.sqrt(fan_in))
    conv_b = jax.random.uniform(kb, (embed_dim,), dtype=jnp.float32,
                                minval=-1.0 / jnp.sqrt(fan_in),
                                maxval=1.0 / jnp.sqrt(fan_in))
    cls_token = jax.random.normal(kc, (1, 1, embed_dim), dtype=jnp.float32) * 1e-6
    pos_embed = jax.random.truncated_normal(
        kp, -2.0, 2.0, (1, num_tokens, embed_dim), dtype=jnp.float32) * 0.02

    out = embedding_layer_forward(x, conv_w, conv_b, cls_token, pos_embed, patch_size)
    out = jax.block_until_ready(out)

    ref = _reference(x, conv_w, conv_b, cls_token, pos_embed, patch_size)
    assert out.shape == (B, num_tokens, embed_dim)
    # bf16 matmul operands -> ~1e-2 relative tolerance vs f32 reference.
    assert jnp.allclose(out, ref, atol=1e-2, rtol=1e-2)

    print("KERNEL_OK")
</pallas_src>

<mosaic_0001>
module attributes {stable_mosaic.version = 11 : i64} {
  func.func @_embed_kernel(%arg0: i32, %arg1: i32, %arg2: memref<1x16x128xbf16, #tpu.memory_space<vmem>>, %arg3: memref<128x128xbf16, #tpu.memory_space<vmem>>, %arg4: memref<16x128xf32, #tpu.memory_space<vmem>>, %arg5: memref<1x16x128xf32, #tpu.memory_space<vmem>>) attributes {dimension_semantics = [#tpu.dimension_semantics<parallel>, #tpu.dimension_semantics<parallel>], iteration_bounds = array<i64: 2, 1>, scalar_prefetch = 0 : i64, scratch_operands = 0 : i64, tpu.core_type = #tpu.core_type<tc>, window_params = [{transform_indices = @transform_0, window_bounds = array<i64: 1, 16, 128>}, {pipeline_mode = #tpu.pipeline_mode<synchronous>, transform_indices = @transform_1, window_bounds = array<i64: 128, 128>}, {transform_indices = @transform_2, window_bounds = array<i64: 16, 128>}, {transform_indices = @transform_3, window_bounds = array<i64: 1, 16, 128>}]} {
    %c0 = arith.constant 0 : index
    %c0_0 = arith.constant 0 : index
    %c0_1 = arith.constant 0 : index
    %0 = vector.load %arg2[%c0, %c0_0, %c0_1] : memref<1x16x128xbf16, #tpu.memory_space<vmem>>, vector<1x16x128xbf16>
    %1 = vector.shape_cast %0 : vector<1x16x128xbf16> to vector<16x128xbf16>
    %c0_2 = arith.constant 0 : index
    %c0_3 = arith.constant 0 : index
    %2 = vector.load %arg3[%c0_2, %c0_3] : memref<128x128xbf16, #tpu.memory_space<vmem>>, vector<128x128xbf16>
    %cst = arith.constant dense<0.000000e+00> : vector<16x128xf32>
    %3 = tpu.matmul %1, %2, %cst {dimension_numbers = #tpu.dot_dimension_numbers<[1], [0], [0], [1], [0, 0, 1, 1], [], []>} : vector<16x128xbf16>, vector<128x128xbf16>, vector<16x128xf32> -> vector<16x128xf32>
    %c0_4 = arith.constant 0 : index
    %c0_5 = arith.constant 0 : index
    %4 = vector.load %arg4[%c0_4, %c0_5] : memref<16x128xf32, #tpu.memory_space<vmem>>, vector<16x128xf32>
    %5 = arith.addf %3, %4 : vector<16x128xf32>
    %c0_6 = arith.constant 0 : index
    %c0_7 = arith.constant 0 : index
    %c0_8 = arith.constant 0 : index
    %6 = vector.load %arg5[%c0_6, %c0_7, %c0_8] : memref<1x16x128xf32, #tpu.memory_space<vmem>>, vector<1x16x128xf32>
    %7 = vector.shape_cast %6 : vector<1x16x128xf32> to vector<16x128xf32>
    %8 = vector.shape_cast %5 : vector<16x128xf32> to vector<1x16x128xf32>
    tpu.vector_store %arg5[%c0_6, %c0_7, %c0_8], %8 {strides = array<i32>} : memref<1x16x128xf32, #tpu.memory_space<vmem>>, vector<1x16x128xf32>,
    return
  }
  func.func @transform_0(%arg0: i32, %arg1: i32) -> (i32, i32, i32) {
    %c0_i32 = arith.constant 0 : i32
    %c0_i32_0 = arith.constant 0 : i32
    return %arg0, %arg1, %c0_i32 : i32, i32, i32
  }
  func.func @transform_1(%arg0: i32, %arg1: i32) -> (i32, i32) {
    %c0_i32 = arith.constant 0 : i32
    %c0_i32_0 = arith.constant 0 : i32
    %c0_i32_1 = arith.constant 0 : i32
    return %c0_i32, %c0_i32_0 : i32, i32
  }
  func.func @transform_2(%arg0: i32, %arg1: i32) -> (i32, i32) {
    %c0_i32 = arith.constant 0 : i32
    %c0_i32_0 = arith.constant 0 : i32
    return %arg1, %c0_i32 : i32, i32
  }
  func.func @transform_3(%arg0: i32, %arg1: i32) -> (i32, i32, i32) {
    %c0_i32 = arith.constant 0 : i32
    %c0_i32_0 = arith.constant 0 : i32
    return %arg0, %arg1, %c0_i32 : i32, i32, i32
  }
}

</mosaic_0001>

<bundles_post_ra>
// kernel: embedding_layer_forward.1
= control target key start
LH: loop header
LB: loop body
LE: loop exit
PB: predicated region body
PF: predicated region fallthrough
CT: control target
= control target key end

     0   :  { %s551_s12 = smov 0   ;;  %s553_s13 = smov 0   ;;  %s614_s0 = inlined_call_operand.vmem [shape: bf16[2,16,128], index: 0, kind: input, shape index: {}]   ;;  %s615_s1 = inlined_call_operand.vmem [shape: bf16[128,128], index: 1, kind: input, shape index: {}]   ;;  %s616_s2 = inlined_call_operand.vmem [shape: f32[16,128], index: 2, kind: input, shape index: {}]   ;;  %s617_s3 = inlined_call_operand.vmem [shape: f32[2,16,128], index: 3, kind: output, shape index: {}]  }
   0x1   :  { %s555_s14 = smov 0  }
   0x2 LB: > { %s25_s15 = sadd.s32 1, %s525_s13  ;;  %p429_p0 = scmp.ge.s32.totalorder %s529_s14, 1  ;;  %s529_s14 = sphi %s555_s14, %s13_s14   ;;  %s525_s13 = sphi %s553_s13, %s619_s13   ;;  %s521_s12 = sphi %s551_s12, %s618_s12  }
   0x3   : > { %p27_p1 = scmp.ge.s32.totalorder %s25_s15, 2  ;;  %p169_p2 = scmp.lt.s32.totalorder %s529_s14, 3 }
   0x5   : > { %s621_s15 = smov (%p27_p1, %s25_s15), 0  ;;  %p170_p3 = pnand %p429_p0, %p169_p2 }
   0x6   : > { %p207_p4 = scmp.lt.s32.totalorder (!%p170_p3), %s521_s12, 1 }
   0x7   : > { %173 = sbr.rel (%p170_p3) target bundleno = 181 (0xb5), region = 32 }
   0xc   : > { %v482_v0 = vld [vmem:[%s615_s1 + $0x38] sm:$0xff]  ;;  %v481_v1 = vld [vmem:[%s615_s1 + $0x30] sm:$0xff]  ;;  %v480_v2 = vld [vmem:[%s615_s1 + $0x28] sm:$0xff]  ;;  %s623_s12 = smov (!%p207_p4, %s521_s12), 1 }
   0xd   : > { %306 = vmatpush.bf16.msra.mxu0 %v482_v0  ;;  %v479_v3 = vld [vmem:[%s615_s1 + $0x20] sm:$0xff]  ;;  %v478_v4 = vld [vmem:[%s615_s1 + $0x18] sm:$0xff]  ;;  %v477_v5 = vld [vmem:[%s615_s1 + $0x10] sm:$0xff]  ;;  %s472_s30 = sshll.u32 %s623_s12, 3  ;;  %s473_s9 = sshll.u32 %s623_s12, 4 }
   0xe   : > { %v476_v6 = vld [vmem:[%s615_s1 + $0x8] sm:$0xff]  ;;  %v475_v7 = vld [vmem:[%s615_s1] sm:$0xff]  ;;  %s214_s8 = scalar_lea.vmem %s614_s0, %s472_s30  ;;  %s230_s18 = scalar_lea.vmem %s617_s3, %s473_s9 }
   0xf   : > { %v474_v8 = vld [vmem:[%s214_s8] sm:$0xff]  ;;  %v251_v12 = vld [vmem:[%s616_s2 + $0x8] sm:$0xff] }
  0x10   : > { %v250_v9 = vld [vmem:[%s616_s2] sm:$0xff] }
  0x11   : > { %307 = vmatpush.bf16.msra.mxu0 %v481_v1 }
  0x15   : > { %308 = vmatpush.bf16.msra.mxu0 %v480_v2 }
  0x19   : > { %309 = vmatpush.bf16.msra.mxu0 %v479_v3 }
  0x1d   : > { %310 = vmatpush.bf16.msra.mxu0 %v478_v4 }
  0x21   : > { %311 = vmatpush.bf16.msra.mxu0 %v477_v5 }
  0x25   : > { %312 = vmatpush.bf16.msra.mxu0 %v476_v6 }
  0x29   : > { %313 = vmatpush.bf16.msra.mxu0 %v475_v7 }
  0x2c   : > { %314 = vmatmul.bf16.vlgmr.msra.gmra.mxu0 %v474_v8 }
  0xa9   : > { %v315_v10 = vpop.f32.mrf.mxu0 }
  0xaa   : > { %v316_v11 = vadd.f32 %v315_v10, %v250_v9 }
  0xac   : > { %320 = vst [vmem:[%s230_s18] sm:$0xff] %v316_v11 }
  0xb1   : > { %v317_v13 = vpop.f32.mrf.mxu0 }
  0xb2   : > { %v318_v14 = vadd.f32 %v317_v13, %v251_v12 }
  0xb4   : > { %321 = vst [vmem:[%s230_s18 + $0x8] sm:$0xff] %v318_v14 }
  0xb5 PF: > { %s13_s14 = sadd.s32 1, %s529_s14   ;;  %s618_s12 = smov %s525_s13 }
  0xb6   : > { %p10_p5 = scmp.ge.s32.totalorder %s13_s14, 4   ;;  %s619_s13 = smov %s621_s15 }
  0xb8   :  { %12 = sbr.rel (!%p10_p5) target bundleno = 2 (0x2), region = 65 }

</bundles_post_ra>
